<compile_context>
chip_gen: v7x
topology: tpu7x:2x2x1
jax: 0.10.0
libtpu: 0.0.40
codegen_flags: <defaults>
</compile_context>

<pallas_src>
import functools

import jax
import jax.numpy as jnp
import numpy as np
from jax.experimental import pallas as pl
from jax.experimental.pallas import tpu as pltpu


def _policy_kernel(seed_ref, ob_ref, w1_ref, b1_ref, w2_ref, b2_ref,
                   w3_ref, b3_ref, out_ref, *, deterministic, mxu_dtype):
    f32 = jnp.float32

    # MLP trunk: Linear(s_dim,128)+ReLU, Linear(128,128)+ReLU  (MXU, f32 accum)
    x = ob_ref[...].astype(mxu_dtype)
    h1 = jnp.dot(x, w1_ref[...].astype(mxu_dtype), preferred_element_type=f32)
    h1 = jnp.maximum(h1 + b1_ref[...], 0.0)
    h2 = jnp.dot(h1.astype(mxu_dtype), w2_ref[...].astype(mxu_dtype),
                 preferred_element_type=f32)
    h2 = jnp.maximum(h2 + b2_ref[...], 0.0)

    # Categorical head: Linear(128, a_dim) -> logits
    logits = jnp.dot(h2.astype(mxu_dtype), w3_ref[...].astype(mxu_dtype),
                     preferred_element_type=f32)
    logits = logits + b3_ref[...]

    tb, a_dim = logits.shape                       # static tile shape

    # numerically stable log-softmax pieces
    m = jnp.max(logits, axis=-1, keepdims=True)
    shifted = logits - m
    lse = jnp.log(jnp.sum(jnp.exp(shifted), axis=-1, keepdims=True))

    col = jax.lax.broadcasted_iota(jnp.int32, (tb, a_dim), 1)

    if deterministic:
        # dist.mode(): argmax of logits; no noise generated / DMA'd at all.
        score = logits
    else:
        # dist.sample() via Gumbel-max; noise from an in-kernel stateless hash
        # keyed on (seed, global row, col) -> grid-invariant sampling.
        row0 = pl.program_id(0) * tb
        rows = (jax.lax.broadcasted_iota(jnp.int32, (tb, a_dim), 0)
                + row0).astype(jnp.uint32)
        cols = col.astype(jnp.uint32)
        seed_u = seed_ref[0].astype(jnp.uint32)
        h = (seed_u
             + rows * jnp.uint32(0x9E3779B1)
             + cols * jnp.uint32(0x85EBCA77))
        h = h ^ (h >> 16)
        h = h * jnp.uint32(0x7FEB352D)
        h = h ^ (h >> 15)
        h = h * jnp.uint32(0x846CA68B)
        h = h ^ (h >> 16)
        u = (h >> 8).astype(jnp.int32).astype(f32) * (1.0 / (1 << 24))
        u = jnp.clip(u, 1e-6, 1.0 - 1e-6)
        gumbel = -jnp.log(-jnp.log(u))             # EUP work, otherwise idle
        score = logits + gumbel

    # first index attaining the max (matches torch argmax tie-breaking)
    smax = jnp.max(score, axis=-1, keepdims=True)
    cand = jnp.where(score == smax, col, jnp.int32(a_dim))
    action = jnp.min(cand, axis=-1, keepdims=True)            # (tb, 1) int32

    if deterministic:
        # log-softmax evaluated at argmax(logits) is exactly -lse
        lp_col = -lse                                          # (tb, 1)
    else:
        logp = shifted - lse
        lp_col = jnp.sum(jnp.where(col == action, logp, 0.0),
                         axis=-1, keepdims=True)               # (tb, 1)

    # packed output slab: column 0 = action (as f32), column 1 = log_prob
    col2 = jax.lax.broadcasted_iota(jnp.int32, (tb, 2), 1)
    out_ref[...] = jnp.where(col2 == 0, action.astype(f32), lp_col)


def policy_net_forward(ob, params, seed=0, deterministic=False,
                       tb=None, mxu_dtype=jnp.bfloat16):
    """Pallas implementation of PolicyNet.forward (discrete / conti=False).

    Returns (action[B] int32, log_probs[B,1] f32), matching
    `return (action[:, 0], dist.log_probs(action))`.
    """
    w1, b1, w2, b2, w3, b3 = params
    B, s_dim = ob.shape
    hidden = w1.shape[1]
    a_dim = w3.shape[1]

    # Batch tile: full batch if small, else 512-row tiles (>=85% HBM roofline,
    # amortizes the ~0.35us/step overhead).  Weights (~75 KB f32 / ~38 KB bf16)
    # stay VMEM-resident, so even v7x's 64 MiB VMEM has ample headroom.
    if tb is None:
        tb = B if B <= 512 else 512
    num_tiles = pl.cdiv(B, tb)

    seed_arr = jnp.asarray([seed], dtype=jnp.int32)
    kernel = functools.partial(_policy_kernel,
                               deterministic=bool(deterministic),
                               mxu_dtype=mxu_dtype)

    resident = lambda shape: pl.BlockSpec(shape, lambda i, s: (0,) * len(shape))

    grid_spec = pltpu.PrefetchScalarGridSpec(
        num_scalar_prefetch=1,              # seed lands in SMEM
        grid=(num_tiles,),
        in_specs=[
            pl.BlockSpec((tb, s_dim), lambda i, s: (i, 0)),   # ob tile (pipelined)
            resident(w1.shape), resident(b1.shape),
            resident(w2.shape), resident(b2.shape),
            resident(w3.shape), resident(b3.shape),
        ],
        out_specs=pl.BlockSpec((tb, 2), lambda i, s: (i, 0)),
    )

    packed = pl.pallas_call(
        kernel,
        out_shape=jax.ShapeDtypeStruct((B, 2), jnp.float32),
        grid_spec=grid_spec,
        compiler_params=pltpu.CompilerParams(
            dimension_semantics=("parallel",)),   # batch tiles are independent
    )(seed_arr, ob, w1, b1, w2, b2, w3, b3)

    action = packed[:, 0].astype(jnp.int32)        # (B,)   == action[:, 0]
    log_probs = packed[:, 1:2]                     # (B, 1) == dist.log_probs(action)
    return action, log_probs


def init_params(key, s_dim, a_dim, hidden=128):
    """Mirrors orthogonal(gain=sqrt(2)) weight init + zero bias."""
    k1, k2, k3 = jax.random.split(key, 3)
    ortho = jax.nn.initializers.orthogonal(scale=np.sqrt(2.0))
    w1 = ortho(k1, (s_dim, hidden), jnp.float32)
    b1 = jnp.zeros((1, hidden), jnp.float32)
    w2 = ortho(k2, (hidden, hidden), jnp.float32)
    b2 = jnp.zeros((1, hidden), jnp.float32)
    w3 = ortho(k3, (hidden, a_dim), jnp.float32)
    b3 = jnp.zeros((1, a_dim), jnp.float32)
    return (w1, b1, w2, b2, w3, b3)


if __name__ == "__main__":
    key = jax.random.PRNGKey(0)
    k_param, k_ob = jax.random.split(key)

    B, s_dim, a_dim = 8, 16, 6
    params = init_params(k_param, s_dim, a_dim)
    ob = jax.random.normal(k_ob, (B, s_dim), dtype=jnp.float32)

    # stochastic path (dist.sample) and deterministic path (dist.mode), bf16 MXU
    action, log_probs = policy_net_forward(ob, params, seed=1234,
                                           deterministic=False)
    action_det, log_probs_det = policy_net_forward(ob, params, seed=0,
                                                   deterministic=True)

    # f32-MXU deterministic run for an exact cross-check against plain JAX
    action_f32, log_probs_f32 = policy_net_forward(ob, params, seed=0,
                                                   deterministic=True,
                                                   mxu_dtype=jnp.float32)

    jax.block_until_ready((action, log_probs, action_det, log_probs_det,
                           action_f32, log_probs_f32))

    assert action.shape == (B,) and log_probs.shape == (B, 1)
    assert action_det.shape == (B,) and log_probs_det.shape == (B, 1)
    assert bool(jnp.all((action >= 0) & (action < a_dim)))
    assert bool(jnp.all((action_det >= 0) & (action_det < a_dim)))
    assert bool(jnp.all(log_probs <= 0.0))
    assert bool(jnp.all(log_probs_det <= 0.0))

    # reference check (deterministic path, f32 matmuls)
    w1, b1, w2, b2, w3, b3 = params
    h = jnp.maximum(ob @ w1 + b1, 0.0)
    h = jnp.maximum(h @ w2 + b2, 0.0)
    ref_logits = h @ w3 + b3
    ref_act = jnp.argmax(ref_logits, axis=-1).astype(jnp.int32)
    ref_lp = (jnp.max(ref_logits, axis=-1, keepdims=True)
              - jax.scipy.special.logsumexp(ref_logits, axis=-1, keepdims=True))
    assert bool(jnp.all(action_f32 == ref_act))
    assert bool(jnp.max(jnp.abs(log_probs_f32 - ref_lp)) < 1e-4)

    print("KERNEL_OK")
</pallas_src>

<mosaic_0001>
module attributes {stable_mosaic.version = 11 : i64} {
  func.func @_policy_kernel(%arg0: i32, %arg1: memref<1xi32, #tpu.memory_space<smem>>, %arg2: memref<8x16xf32, #tpu.memory_space<vmem>>, %arg3: memref<16x128xf32, #tpu.memory_space<vmem>>, %arg4: memref<1x128xf32, #tpu.memory_space<vmem>>, %arg5: memref<128x128xf32, #tpu.memory_space<vmem>>, %arg6: memref<1x128xf32, #tpu.memory_space<vmem>>, %arg7: memref<128x6xf32, #tpu.memory_space<vmem>>, %arg8: memref<1x6xf32, #tpu.memory_space<vmem>>, %arg9: memref<8x2xf32, #tpu.memory_space<vmem>>) attributes {dimension_semantics = [#tpu.dimension_semantics<parallel>], iteration_bounds = array<i64: 1>, scalar_prefetch = 1 : i64, scratch_operands = 0 : i64, tpu.core_type = #tpu.core_type<tc>, window_params = [{transform_indices = @transform_0, window_bounds = array<i64: 8, 16>}, {pipeline_mode = #tpu.pipeline_mode<synchronous>, transform_indices = @transform_1, window_bounds = array<i64: 16, 128>}, {pipeline_mode = #tpu.pipeline_mode<synchronous>, transform_indices = @transform_2, window_bounds = array<i64: 1, 128>}, {pipeline_mode = #tpu.pipeline_mode<synchronous>, transform_indices = @transform_3, window_bounds = array<i64: 128, 128>}, {pipeline_mode = #tpu.pipeline_mode<synchronous>, transform_indices = @transform_4, window_bounds = array<i64: 1, 128>}, {pipeline_mode = #tpu.pipeline_mode<synchronous>, transform_indices = @transform_5, window_bounds = array<i64: 128, 6>}, {pipeline_mode = #tpu.pipeline_mode<synchronous>, transform_indices = @transform_6, window_bounds = array<i64: 1, 6>}, {transform_indices = @transform_7, window_bounds = array<i64: 8, 2>}]} {
    %c0 = arith.constant 0 : index
    %c0_0 = arith.constant 0 : index
    %0 = vector.load %arg2[%c0, %c0_0] : memref<8x16xf32, #tpu.memory_space<vmem>>, vector<8x16xf32>
    %1 = arith.truncf %0 : vector<8x16xf32> to vector<8x16xbf16>
    %c0_1 = arith.constant 0 : index
    %c0_2 = arith.constant 0 : index
    %2 = vector.load %arg3[%c0_1, %c0_2] : memref<16x128xf32, #tpu.memory_space<vmem>>, vector<16x128xf32>
    %3 = arith.truncf %2 : vector<16x128xf32> to vector<16x128xbf16>
    %cst = arith.constant dense<0.000000e+00> : vector<8x128xf32>
    %4 = tpu.matmul %1, %3, %cst {dimension_numbers = #tpu.dot_dimension_numbers<[1], [0], [0], [1], [0, 0, 1, 1], [], []>} : vector<8x16xbf16>, vector<16x128xbf16>, vector<8x128xf32> -> vector<8x128xf32>
    %c0_3 = arith.constant 0 : index
    %c0_4 = arith.constant 0 : index
    %5 = vector.load %arg4[%c0_3, %c0_4] : memref<1x128xf32, #tpu.memory_space<vmem>>, vector<1x128xf32>
    %6 = vector.broadcast %5 : vector<1x128xf32> to vector<8x128xf32>
    %7 = arith.addf %4, %6 : vector<8x128xf32>
    %cst_5 = arith.constant 0.000000e+00 : f32
    %8 = vector.broadcast %cst_5 : f32 to vector<8x128xf32>
    %9 = arith.maximumf %7, %8 : vector<8x128xf32>
    %10 = arith.truncf %9 : vector<8x128xf32> to vector<8x128xbf16>
    %c0_6 = arith.constant 0 : index
    %c0_7 = arith.constant 0 : index
    %11 = vector.load %arg5[%c0_6, %c0_7] : memref<128x128xf32, #tpu.memory_space<vmem>>, vector<128x128xf32>
    %12 = arith.truncf %11 : vector<128x128xf32> to vector<128x128xbf16>
    %cst_8 = arith.constant dense<0.000000e+00> : vector<8x128xf32>
    %13 = tpu.matmul %10, %12, %cst_8 {dimension_numbers = #tpu.dot_dimension_numbers<[1], [0], [0], [1], [0, 0, 1, 1], [], []>} : vector<8x128xbf16>, vector<128x128xbf16>, vector<8x128xf32> -> vector<8x128xf32>
    %c0_9 = arith.constant 0 : index
    %c0_10 = arith.constant 0 : index
    %14 = vector.load %arg6[%c0_9, %c0_10] : memref<1x128xf32, #tpu.memory_space<vmem>>, vector<1x128xf32>
    %15 = vector.broadcast %14 : vector<1x128xf32> to vector<8x128xf32>
    %16 = arith.addf %13, %15 : vector<8x128xf32>
    %cst_11 = arith.constant 0.000000e+00 : f32
    %17 = vector.broadcast %cst_11 : f32 to vector<8x128xf32>
    %18 = arith.maximumf %16, %17 : vector<8x128xf32>
    %19 = arith.truncf %18 : vector<8x128xf32> to vector<8x128xbf16>
    %c0_12 = arith.constant 0 : index
    %c0_13 = arith.constant 0 : index
    %20 = vector.load %arg7[%c0_12, %c0_13] : memref<128x6xf32, #tpu.memory_space<vmem>>, vector<128x6xf32>
    %21 = arith.truncf %20 : vector<128x6xf32> to vector<128x6xbf16>
    %cst_14 = arith.constant dense<0.000000e+00> : vector<8x6xf32>
    %22 = tpu.matmul %19, %21, %cst_14 {dimension_numbers = #tpu.dot_dimension_numbers<[1], [0], [0], [1], [0, 0, 1, 1], [], []>} : vector<8x128xbf16>, vector<128x6xbf16>, vector<8x6xf32> -> vector<8x6xf32>
    %c0_15 = arith.constant 0 : index
    %c0_16 = arith.constant 0 : index
    %23 = vector.load %arg8[%c0_15, %c0_16] : memref<1x6xf32, #tpu.memory_space<vmem>>, vector<1x6xf32>
    %24 = vector.broadcast %23 : vector<1x6xf32> to vector<8x6xf32>
    %25 = arith.addf %22, %24 : vector<8x6xf32>
    %cst_17 = arith.constant dense<0xFF800000> : vector<8xf32>
    %26 = vector.multi_reduction <maximumf>, %25, %cst_17 [1] : vector<8x6xf32> to vector<8xf32>
    %27 = vector.shape_cast %26 : vector<8xf32> to vector<8x1xf32>
    %28 = vector.broadcast %27 : vector<8x1xf32> to vector<8x6xf32>
    %29 = arith.subf %25, %28 : vector<8x6xf32>
    %30 = math.exp %29 : vector<8x6xf32>
    %cst_18 = arith.constant dense<0.000000e+00> : vector<8xf32>
    %31 = vector.multi_reduction <add>, %30, %cst_18 [1] : vector<8x6xf32> to vector<8xf32>
    %32 = vector.shape_cast %31 : vector<8xf32> to vector<8x1xf32>
    %33 = math.log %32 : vector<8x1xf32>
    %34 = tpu.iota {dimensions = array<i32: 1>} : vector<8x6xi32>
    %c8_i32 = arith.constant 8 : i32
    %35 = arith.muli %arg0, %c8_i32 : i32
    %36 = tpu.iota {dimensions = array<i32: 0>} : vector<8x6xi32>
    %37 = vector.broadcast %35 : i32 to vector<8x6xi32>
    %38 = arith.addi %36, %37 : vector<8x6xi32>
    %c0_19 = arith.constant 0 : index
    %39 = memref.load %arg1[%c0_19] : memref<1xi32, #tpu.memory_space<smem>>
    %c-1640531535_i32 = arith.constant -1640531535 : i32
    %40 = vector.broadcast %c-1640531535_i32 : i32 to vector<8x6xi32>
    %41 = arith.muli %38, %40 : vector<8x6xi32>
    %42 = vector.broadcast %39 : i32 to vector<8x6xi32>
    %43 = arith.addi %42, %41 : vector<8x6xi32>
    %c-2048144777_i32 = arith.constant -2048144777 : i32
    %44 = vector.broadcast %c-2048144777_i32 : i32 to vector<8x6xi32>
    %45 = arith.muli %34, %44 : vector<8x6xi32>
    %46 = arith.addi %43, %45 : vector<8x6xi32>
    %c16_i32 = arith.constant 16 : i32
    %47 = vector.broadcast %c16_i32 : i32 to vector<8x6xi32>
    %48 = arith.shrui %46, %47 : vector<8x6xi32>
    %49 = arith.xori %46, %48 : vector<8x6xi32>
    %c2146121005_i32 = arith.constant 2146121005 : i32
    %50 = vector.broadcast %c2146121005_i32 : i32 to vector<8x6xi32>
    %51 = arith.muli %49, %50 : vector<8x6xi32>
    %c15_i32 = arith.constant 15 : i32
    %52 = vector.broadcast %c15_i32 : i32 to vector<8x6xi32>
    %53 = arith.shrui %51, %52 : vector<8x6xi32>
    %54 = arith.xori %51, %53 : vector<8x6xi32>
    %c-2073254261_i32 = arith.constant -2073254261 : i32
    %55 = vector.broadcast %c-2073254261_i32 : i32 to vector<8x6xi32>
    %56 = arith.muli %54, %55 : vector<8x6xi32>
    %c16_i32_20 = arith.constant 16 : i32
    %57 = vector.broadcast %c16_i32_20 : i32 to vector<8x6xi32>
    %58 = arith.shrui %56, %57 : vector<8x6xi32>
    %59 = arith.xori %56, %58 : vector<8x6xi32>
    %c8_i32_21 = arith.constant 8 : i32
    %60 = vector.broadcast %c8_i32_21 : i32 to vector<8x6xi32>
    %61 = arith.shrui %59, %60 : vector<8x6xi32>
    %62 = arith.sitofp %61 : vector<8x6xi32> to vector<8x6xf32>
    %cst_22 = arith.constant 5.96046448E-8 : f32
    %63 = vector.broadcast %cst_22 : f32 to vector<8x6xf32>
    %64 = arith.mulf %62, %63 : vector<8x6xf32>
    %cst_23 = arith.constant 9.99999997E-7 : f32
    %cst_24 = arith.constant 0.999998986 : f32
    %65 = vector.broadcast %cst_23 : f32 to vector<8x6xf32>
    %66 = arith.maximumf %65, %64 : vector<8x6xf32>
    %67 = vector.broadcast %cst_24 : f32 to vector<8x6xf32>
    %68 = arith.minimumf %67, %66 : vector<8x6xf32>
    %69 = math.log %68 : vector<8x6xf32>
    %cst_25 = arith.constant 0.000000e+00 : f32
    %70 = vector.broadcast %cst_25 : f32 to vector<8x6xf32>
    %71 = arith.subf %70, %69 : vector<8x6xf32>
    %72 = math.log %71 : vector<8x6xf32>
    %cst_26 = arith.constant 0.000000e+00 : f32
    %73 = vector.broadcast %cst_26 : f32 to vector<8x6xf32>
    %74 = arith.subf %73, %72 : vector<8x6xf32>
    %75 = arith.addf %25, %74 : vector<8x6xf32>
    %cst_27 = arith.constant dense<0xFF800000> : vector<8xf32>
    %76 = vector.multi_reduction <maximumf>, %75, %cst_27 [1] : vector<8x6xf32> to vector<8xf32>
    %77 = vector.shape_cast %76 : vector<8xf32> to vector<8x1xf32>
    %78 = vector.broadcast %77 : vector<8x1xf32> to vector<8x6xf32>
    %79 = arith.cmpf oeq, %75, %78 : vector<8x6xf32>
    %c6_i32 = arith.constant 6 : i32
    %80 = vector.broadcast %c6_i32 : i32 to vector<8x6xi32>
    %81 = arith.select %79, %34, %80 : vector<8x6xi1>, vector<8x6xi32>
    %cst_28 = arith.constant dense<2147483647> : vector<8xi32>
    %82 = vector.multi_reduction <minsi>, %81, %cst_28 [1] : vector<8x6xi32> to vector<8xi32>
    %83 = vector.shape_cast %82 : vector<8xi32> to vector<8x1xi32>
    %84 = vector.broadcast %33 : vector<8x1xf32> to vector<8x6xf32>
    %85 = arith.subf %29, %84 : vector<8x6xf32>
    %86 = vector.broadcast %83 : vector<8x1xi32> to vector<8x6xi32>
    %87 = arith.cmpi eq, %34, %86 : vector<8x6xi32>
    %cst_29 = arith.constant 0.000000e+00 : f32
    %88 = vector.broadcast %cst_29 : f32 to vector<8x6xf32>
    %89 = arith.select %87, %85, %88 : vector<8x6xi1>, vector<8x6xf32>
    %cst_30 = arith.constant dense<0.000000e+00> : vector<8xf32>
    %90 = vector.multi_reduction <add>, %89, %cst_30 [1] : vector<8x6xf32> to vector<8xf32>
    %91 = vector.shape_cast %90 : vector<8xf32> to vector<8x1xf32>
    %92 = tpu.iota {dimensions = array<i32: 1>} : vector<8x2xi32>
    %c0_i32 = arith.constant 0 : i32
    %93 = vector.broadcast %c0_i32 : i32 to vector<8x2xi32>
    %94 = arith.cmpi eq, %92, %93 : vector<8x2xi32>
    %95 = arith.sitofp %83 : vector<8x1xi32> to vector<8x1xf32>
    %96 = vector.shape_cast %95 : vector<8x1xf32> to vector<8x1xf32>
    %97 = vector.broadcast %96 : vector<8x1xf32> to vector<8x2xf32>
    %98 = vector.shape_cast %91 : vector<8x1xf32> to vector<8x1xf32>
    %99 = vector.broadcast %98 : vector<8x1xf32> to vector<8x2xf32>
    %100 = arith.select %94, %97, %99 : vector<8x2xi1>, vector<8x2xf32>
    %c0_31 = arith.constant 0 : index
    %c0_32 = arith.constant 0 : index
    %101 = vector.load %arg9[%c0_31, %c0_32] : memref<8x2xf32, #tpu.memory_space<vmem>>, vector<8x2xf32>
    tpu.vector_store %arg9[%c0_31, %c0_32], %100 {strides = array<i32>} : memref<8x2xf32, #tpu.memory_space<vmem>>, vector<8x2xf32>,
    return
  }
  func.func @transform_0(%arg0: i32, %arg1: memref<1xi32, #tpu.memory_space<smem>>) -> (i32, i32) {
    %c0_i32 = arith.constant 0 : i32
    %c0_i32_0 = arith.constant 0 : i32
    return %arg0, %c0_i32 : i32, i32
  }
  func.func @transform_1(%arg0: i32, %arg1: memref<1xi32, #tpu.memory_space<smem>>) -> (i32, i32) {
    %c0_i32 = arith.constant 0 : i32
    %c0_i32_0 = arith.constant 0 : i32
    %c0_i32_1 = arith.constant 0 : i32
    return %c0_i32, %c0_i32_0 : i32, i32
  }
  func.func @transform_2(%arg0: i32, %arg1: memref<1xi32, #tpu.memory_space<smem>>) -> (i32, i32) {
    %c0_i32 = arith.constant 0 : i32
    %c0_i32_0 = arith.constant 0 : i32
    %c0_i32_1 = arith.constant 0 : i32
    return %c0_i32, %c0_i32_0 : i32, i32
  }
  func.func @transform_3(%arg0: i32, %arg1: memref<1xi32, #tpu.memory_space<smem>>) -> (i32, i32) {
    %c0_i32 = arith.constant 0 : i32
    %c0_i32_0 = arith.constant 0 : i32
    %c0_i32_1 = arith.constant 0 : i32
    return %c0_i32, %c0_i32_0 : i32, i32
  }
  func.func @transform_4(%arg0: i32, %arg1: memref<1xi32, #tpu.memory_space<smem>>) -> (i32, i32) {
    %c0_i32 = arith.constant 0 : i32
    %c0_i32_0 = arith.constant 0 : i32
    %c0_i32_1 = arith.constant 0 : i32
    return %c0_i32, %c0_i32_0 : i32, i32
  }
  func.func @transform_5(%arg0: i32, %arg1: memref<1xi32, #tpu.memory_space<smem>>) -> (i32, i32) {
    %c0_i32 = arith.constant 0 : i32
    %c0_i32_0 = arith.constant 0 : i32
    %c0_i32_1 = arith.constant 0 : i32
    return %c0_i32, %c0_i32_0 : i32, i32
  }
  func.func @transform_6(%arg0: i32, %arg1: memref<1xi32, #tpu.memory_space<smem>>) -> (i32, i32) {
    %c0_i32 = arith.constant 0 : i32
    %c0_i32_0 = arith.constant 0 : i32
    %c0_i32_1 = arith.constant 0 : i32
    return %c0_i32, %c0_i32_0 : i32, i32
  }
  func.func @transform_7(%arg0: i32, %arg1: memref<1xi32, #tpu.memory_space<smem>>) -> (i32, i32) {
    %c0_i32 = arith.constant 0 : i32
    %c0_i32_0 = arith.constant 0 : i32
    return %arg0, %c0_i32 : i32, i32
  }
}

</mosaic_0001>

<bundles_post_ra>
// kernel: tpu_custom_call.1
= control target key start
LH: loop header
LB: loop body
LE: loop exit
PB: predicated region body
PF: predicated region fallthrough
CT: control target
= control target key end

     0   :  { %14 = vsyncpa [#allocation5], 0  ;;  %s429_s27 = smov [#allocation4]   ;;  %s640_s0 = inlined_call_operand.<no memory space> [shape: s32[1], index: 0, kind: input, shape index: {}]   ;;  %s641_s1 = inlined_call_operand.hbm [shape: f32[8,16], index: 1, kind: input, shape index: {}]   ;;  %s642_s2 = inlined_call_operand.vmem [shape: f32[16,128], index: 2, kind: input, shape index: {}]   ;;  %s643_s3 = inlined_call_operand.vmem [shape: f32[1,128], index: 3, kind: input, shape index: {}]   ;;  %s644_s4 = inlined_call_operand.vmem [shape: f32[128,128], index: 4, kind: input, shape index: {}]   ;;  %s645_s5 = inlined_call_operand.vmem [shape: f32[1,128], index: 5, kind: input, shape index: {}]   ;;  %s646_s6 = inlined_call_operand.vmem [shape: f32[128,6], index: 6, kind: input, shape index: {}]   ;;  %s647_s7 = inlined_call_operand.vmem [shape: f32[1,6], index: 7, kind: input, shape index: {}]   ;;  %s648_s8 = inlined_call_operand.vmem [shape: f32[8,2], index: 8, kind: output, shape index: {}]  }
   0x1   :  { %s21_s28 = sshll.u32 %s429_s27, 4  ;;  %s405_s9 = scalar_lea.hbm %s641_s1, 128  ;;  %s22_s28 = int_to_ptr.vmem [resolvable:$true] %s21_s28 }
   0x2   :  { %p406_p0 = scmp.ne.s32.totalorder %s641_s1, %s405_s9  ;;  %p409_p1 = scmp.lt.u32.totalorder %s405_s9, %s641_s1 }
   0x4   :  { %p411_p2 = pnand %p409_p1, %p406_p0 }
   0x6   :  { %414 = shalt.err (!%p411_p2)
}
   0x7   :  { %s415_s14 = scalar_lea.vmem %s22_s28, 128  ;;  %p420_p4 = scmp.lt.s32.totalorder %s22_s28, %s22_s28 }
   0x8   :  { %p416_p3 = scmp.ne.s32.totalorder %s22_s28, %s415_s14  ;;  %p421_p5 = scmp.lt.s32.totalorder %s415_s14, %s415_s14 }
   0xa   :  { %p422_p6 = por %p421_p5, %p420_p4 }
   0xc   :  { %p423_p7 = pnand %p422_p6, %p416_p3 }
   0xe   :  { %426 = shalt.err (!%p423_p7)
}
   0xf   :  { %24 = dma.hbm_to_vmem [thread:$0]  %s641_s1, 128, %s22_s28, [#allocation5]  }
  0x10   :  { %427 = dma.done.wait [#allocation5], 128  }
  0x11   :  { %428 = vsyncadd [#allocation5], 4294967168  ;;  %v430_v0 = vmov 0.0   ;;  %vm431_vm0 = vmmov 0   ;;  %v43_v1 = vld [vmem:[%s642_s2] sm:$0xff]  ;;  %v44_v2 = vld [vmem:[%s642_s2 + $0x8] sm:$0xff] }
  0x12   :  { %348 = vmatprep.subr.bf16.mxu0 %v430_v0  ;;  %350 = vmatprep.mubr.msk.bf16.mxu0 %vm431_vm0, %v430_v0  ;;  %v41_v3 = vld [vmem:[#allocation4] sm:$0xff]  ;;  %v45_v4 = vpack.c.bf16 %v44_v2, %v43_v1  ;;  %v100_v6 = vld [vmem:[%s644_s4 + $0x8] sm:$0xff]  ;;  %v101_v7 = vld [vmem:[%s644_s4 + $0x10] sm:$0xff]  ;;  %vm53_vm1 = vcmask 130048   ;;  %vm243_vm2 = vcmask 48128   ;;  %vm317_vm7 = vcmask 15360  }
  0x13   :  { %354 = vmatprep.subr.bf16.mxu1 %v430_v0  ;;  %370 = vmatprep.mubr.msk.bf16.mxu1 %vm431_vm0, %v430_v0  ;;  %v99_v5 = vld [vmem:[%s644_s4] sm:$0xff]  ;;  %v42_v8 = vpack.c.bf16 %v41_v3, %v41_v3  ;;  %v102_v10 = vld [vmem:[%s644_s4 + $0x18] sm:$0xff]  ;;  %v104_v13 = vld [vmem:[%s644_s4 + $0x28] sm:$0xff] }
  0x14   :  { %v115_v9 = vpack.c.bf16 %v100_v6, %v99_v5  ;;  %349 = vmatpush3.bf16.msra.mxu0 %v45_v4  ;;  %v116_v11 = vpack.c.bf16 %v102_v10, %v101_v7  ;;  %v103_v12 = vld [vmem:[%s644_s4 + $0x20] sm:$0xff]  ;;  %v105_v15 = vld [vmem:[%s644_s4 + $0x30] sm:$0xff]  ;;  %v106_v16 = vld [vmem:[%s644_s4 + $0x38] sm:$0xff]  ;;  %v255_v6 = vlaneseq  ;;  %v264_v10 = vstv %s640_s0 }
  0x15   :  { %374 = vmatprep.subr.bf16.mxu0 %v430_v0  ;;  %v117_v14 = vpack.c.bf16 %v104_v13, %v103_v12  ;;  %v118_v17 = vpack.c.bf16 %v106_v16, %v105_v15  ;;  %v107_v18 = vld [vmem:[%s644_s4 + $0x40] sm:$0xff]  ;;  %v108_v19 = vld [vmem:[%s644_s4 + $0x48] sm:$0xff]  ;;  %v109_v21 = vld [vmem:[%s644_s4 + $0x50] sm:$0xff] }
  0x16   :  { %355 = vmatpush3.bf16.msra.mxu1 %v115_v9  ;;  %v119_v20 = vpack.c.bf16 %v108_v19, %v107_v18  ;;  %v110_v22 = vld [vmem:[%s644_s4 + $0x58] sm:$0xff]  ;;  %v111_v24 = vld [vmem:[%s644_s4 + $0x60] sm:$0xff]  ;;  %v112_v25 = vld [vmem:[%s644_s4 + $0x68] sm:$0xff]  ;;  %v259_v7 = vshrl.u32 %v255_v6, 7 }
  0x17   :  { %356 = vmatprep.subr.bf16.mxu1 %v430_v0  ;;  %351 = vmatmul.mubr.msk.bf16.vlgmr.msra.gmra.mrb[0].mxu0 %vm53_vm1, %v42_v8  ;;  %v120_v23 = vpack.c.bf16 %v110_v22, %v109_v21  ;;  %v121_v26 = vpack.c.bf16 %v112_v25, %v111_v24  ;;  %v113_v27 = vld [vmem:[%s644_s4 + $0x70] sm:$0xff]  ;;  %v114_v28 = vld [vmem:[%s644_s4 + $0x78] sm:$0xff]  ;;  %v172_v30 = vld [vmem:[%s646_s6] sm:$0xff]  ;;  %v620_v8 = vand.u32 127, %v255_v6 }
  0x18   :  { %390 = vmatprep.mubr.msk.bf16.mxu0 %vm431_vm0, %v430_v0  ;;  %v122_v29 = vpack.c.bf16 %v114_v28, %v113_v27  ;;  %v173_v31 = vld [vmem:[%s646_s6 + $0x8] sm:$0xff]  ;;  %v174_v32 = vld [vmem:[%s646_s6 + $0x10] sm:$0xff]  ;;  %v175_v34 = vld [vmem:[%s646_s6 + $0x18] sm:$0xff]  ;;  %v263_v9 = vmul.u32 2654435761, %v259_v7 }
  0x19   :  { %v188_v33 = vpack.c.bf16 %v173_v31, %v172_v30  ;;  %v189_v35 = vpack.c.bf16 %v175_v34, %v174_v32  ;;  %v176_v36 = vld [vmem:[%s646_s6 + $0x20] sm:$0xff]  ;;  %v177_v37 = vld [vmem:[%s646_s6 + $0x28] sm:$0xff]  ;;  %v178_v39 = vld [vmem:[%s646_s6 + $0x30] sm:$0xff]  ;;  %v266_v12 = vmul.u32 2246822519, %v620_v8  ;;  %vm314_vm6 = vcmp.eq.s32.totalorder %v620_v8, 0 }
  0x1a   :  { %357 = vmatpush3.bf16.msra.mxu1 %v116_v11  ;;  %v190_v38 = vpack.c.bf16 %v177_v37, %v176_v36  ;;  %v179_v40 = vld [vmem:[%s646_s6 + $0x38] sm:$0xff]  ;;  %v180_v42 = vld [vmem:[%s646_s6 + $0x40] sm:$0xff]  ;;  %v181_v43 = vld [vmem:[%s646_s6 + $0x48] sm:$0xff]  ;;  %v265_v11 = vadd.s32 %v264_v10, %v263_v9 }
  0x1b   :  { %358 = vmatprep.subr.bf16.mxu1 %v430_v0  ;;  %375 = vmatpush3.bf16.msra.mxu0 %v188_v33  ;;  %v191_v41 = vpack.c.bf16 %v179_v40, %v178_v39  ;;  %v192_v44 = vpack.c.bf16 %v181_v43, %v180_v42  ;;  %v182_v45 = vld [vmem:[%s646_s6 + $0x50] sm:$0xff]  ;;  %v183_v46 = vld [vmem:[%s646_s6 + $0x58] sm:$0xff]  ;;  %v324_v48 = vld [vmem:[%s643_s3] ss:$0 sm:$0xff] }
  0x1c   :  { %376 = vmatprep.subr.bf16.mxu0 %v430_v0  ;;  %v193_v47 = vpack.c.bf16 %v183_v46, %v182_v45  ;;  %v184_v56 = vld [vmem:[%s646_s6 + $0x60] sm:$0xff]  ;;  %v185_v57 = vld [vmem:[%s646_s6 + $0x68] sm:$0xff]  ;;  %v186_v59 = vld [vmem:[%s646_s6 + $0x70] sm:$0xff]  ;;  %v267_v13 = vadd.s32 %v266_v12, %v265_v11 }
  0x1d   :  { %v194_v58 = vpack.c.bf16 %v185_v57, %v184_v56  ;;  %v187_v60 = vld [vmem:[%s646_s6 + $0x78] sm:$0xff]  ;;  %v326_v62 = vld [vmem:[%s645_s5] ss:$0 sm:$0xff] }
  0x1e   :  { %359 = vmatpush3.bf16.msra.mxu1 %v117_v14  ;;  %v195_v61 = vpack.c.bf16 %v187_v60, %v186_v59  ;;  %v268_v14 = vshrl.u32 %v267_v13, 16  ;;  %v327_v32 = vld [vmem:[%s647_s7] ss:$0 sm:$0xff] }
  0x1f   :  { %360 = vmatprep.subr.bf16.mxu1 %v430_v0  ;;  %377 = vmatpush3.bf16.msra.mxu0 %v189_v35 }
  0x20   :  { %378 = vmatprep.subr.bf16.mxu0 %v430_v0  ;;  %v269_v15 = vxor.u32 %v268_v14, %v267_v13 }
  0x22   :  { %361 = vmatpush3.bf16.msra.mxu1 %v118_v17  ;;  %v270_v16 = vmul.u32 2146121005, %v269_v15 }
  0x23   :  { %362 = vmatprep.subr.bf16.mxu1 %v430_v0  ;;  %379 = vmatpush3.bf16.msra.mxu0 %v190_v38 }
  0x24   :  { %380 = vmatprep.subr.bf16.mxu0 %v430_v0  ;;  %v271_v17 = vshrl.u32 %v270_v16, 15 }
  0x26   :  { %363 = vmatpush3.bf16.msra.mxu1 %v119_v20  ;;  %v272_v18 = vxor.u32 %v271_v17, %v270_v16 }
  0x27   :  { %364 = vmatprep.subr.bf16.mxu1 %v430_v0  ;;  %381 = vmatpush3.bf16.msra.mxu0 %v191_v41 }
  0x28   :  { %382 = vmatprep.subr.bf16.mxu0 %v430_v0  ;;  %v273_v19 = vmul.u32 2221713035, %v272_v18 }
  0x2a   :  { %365 = vmatpush3.bf16.msra.mxu1 %v120_v23  ;;  %v274_v20 = vshrl.u32 %v273_v19, 16 }
  0x2b   :  { %366 = vmatprep.subr.bf16.mxu1 %v430_v0  ;;  %383 = vmatpush3.bf16.msra.mxu0 %v192_v44 }
  0x2c   :  { %384 = vmatprep.subr.bf16.mxu0 %v430_v0  ;;  %v275_v21 = vxor.u32 %v274_v20, %v273_v19 }
  0x2e   :  { %367 = vmatpush3.bf16.msra.mxu1 %v121_v26  ;;  %v276_v22 = vshrl.u32 %v275_v21, 8 }
  0x2f   :  { %368 = vmatprep.subr.bf16.mxu1 %v430_v0  ;;  %385 = vmatpush3.bf16.msra.mxu0 %v193_v47 }
  0x30   :  { %386 = vmatprep.subr.bf16.mxu0 %v430_v0  ;;  %v277_v23 = vcvt.s32.f32 %v276_v22 }
  0x32   :  { %369 = vmatpush3.bf16.msra.mxu1 %v122_v29  ;;  %v278_v24 = vmul.f32 5.9604645e-08, %v277_v23 }
  0x33   :  { %387 = vmatpush3.bf16.msra.mxu0 %v194_v58 }
  0x34   :  { %388 = vmatprep.subr.bf16.mxu0 %v430_v0  ;;  %v279_v25 = vmax.f32 %v278_v24, 1e-06 }
  0x36   :  { %v280_v26 = vmin.f32 %v279_v25, 0.999999 }
  0x37   :  { %389 = vmatpush3.bf16.msra.mxu0 %v195_v61 }
  0x38   :  { %397 = vlog2.f32 %v280_v26 }
  0x42   :  { %v398_v27 = vpop.eup %397 }
  0x43   :  { %v282_v28 = vmul.f32 0.6931472, %v398_v27 }
  0x45   :  { %v283_v29 = vsub.f32 0.0, %v282_v28 }
  0x47   :  { %399 = vlog2.f32 %v283_v29 }
  0x51   :  { %v400_v30 = vpop.eup %399 }
  0x52   :  { %v285_v31 = vmul.f32 0.6931472, %v400_v30 }
  0x54   :  { %v286_v33 = vsub.f32 0.0, %v285_v31 }
  0xea   :  { %v91_v49 = vpop.f32.mrb[0].mxu0 }
  0xeb   :  { %v92_v50 = vadd.f32 %v324_v48, %v91_v49  ;;  %v352_v51 = vpop.f32.mrb[1].mxu0 }
  0xec   :  { %v94_v52 = vpop.f32.mrb[2].mxu0 }
  0xed   :  { %v97_v53 = vmax.f32 %v92_v50, 0.0  ;;  %v353_v54 = vpop.f32.mrb[3].mxu0 }
  0xef   :  { %v98_v55 = vpack.c.bf16 %v97_v53, %v97_v53 }
  0xf1   :  { %371 = vmatmul.mubr.bf16.vlgmr.msra.gmra.mrb[0].mxu1 %v98_v55 }
 0x1c4   :  { %v164_v63 = vpop.f32.mrb[0].mxu1 }
 0x1c5   :  { %v165_v1 = vadd.f32 %v326_v62, %v164_v63  ;;  %v372_v2 = vpop.f32.mrb[1].mxu1 }
 0x1c6   :  { %v167_v3 = vpop.f32.mrb[2].mxu1 }
 0x1c7   :  { %v170_v4 = vmax.f32 %v165_v1, 0.0  ;;  %v373_v0 = vpop.f32.mrb[3].mxu1 }
 0x1c9   :  { %v171_v5 = vpack.c.bf16 %v170_v4, %v170_v4 }
 0x1cb   :  { %391 = vmatmul.mubr.bf16.vlgmr.msra.gmra.mrb[4].mxu0 %v171_v5 }
 0x29e   :  { %v237_v34 = vpop.f32.mrb[4].mxu0 }
 0x29f   :  { %v238_v35 = vadd.f32 %v327_v32, %v237_v34  ;;  %v392_v36 = vpop.f32.mrb[5].mxu0 }
 0x2a0   :  { %v240_v37 = vpop.f32.mrb[6].mxu0 }
 0x2a1   :  { %v393_v38 = vpop.f32.mrb[7].mxu0  ;;  %v287_v39 = vadd.f32 %v286_v33, %v238_v35  ;;  %v244_v41 = vsel %vm243_vm2, %v238_v35, -inf }
 0x2a3   :  { %v288_v40 = vsel %vm243_vm2, %v287_v39, -inf }
 0x2a4   :  { %289 = vmax.xlane.f32.xlu0 %v288_v40 }
 0x2a8   :  { %245 = vmax.xlane.f32.xlu0 %v244_v41 }
 0x331   :  { %v290_v42 = vpop.xlane.xlu0 %289 }
 0x332   :  { %vm291_vm3 = vcmp.eq.f32.partialorder %v287_v39, %v290_v42 }
 0x333   :  { %v292_v43 = vsel %vm291_vm3, %v620_v8, 6 }
 0x334   :  { %v293_v44 = vsel %vm243_vm2, %v292_v43, 2147483647 }
 0x335   :  { %v246_v45 = vpop.xlane.xlu0 %245  ;;  %v295_v46 = vshra.s32 %v293_v44, 16  ;;  %v294_v52 = vand.u32 65535, %v293_v44 }
 0x336   :  { %v247_v47 = vsub.f32 %v238_v35, %v246_v45 }
 0x337   :  { %v297_v48 = vcvt.s32.f32 %v295_v46  ;;  %v296_v54 = vcvt.s32.f32 %v294_v52 }
 0x338   :  { %v248_v49 = vmul.f32 1.442695, %v247_v47 }
 0x339   :  { %298 = vmin.xlane.f32.xlu1 %v297_v48 }
 0x33a   :  { %401 = vpow2.f32 %v248_v49 }
 0x344   :  { %v402_v50 = vpop.eup %401 }
 0x345   :  { %v250_v51 = vsel %vm243_vm2, %v402_v50, 0.0 }
 0x346   :  { %251 = vadd.xlane.f32.xlu1 %v250_v51 }
 0x3c6   :  { %v299_v53 = vpop.xlane.xlu1 %298 }
 0x3c7   :  { %vm300_vm4 = vcmp.eq.f32.partialorder %v297_v48, %v299_v53  ;;  %v305_v58 = vcvt.f32.s32 %v299_v53 }
 0x3c8   :  { %v301_v55 = vsel %vm300_vm4, %v296_v54, inf }
 0x3c9   :  { %302 = vmin.xlane.f32.xlu0 %v301_v55  ;;  %v306_v61 = vshll.u32 %v305_v58, 16 }
 0x3d3   :  { %v252_v56 = vpop.xlane.xlu1 %251 }
 0x3d4   :  { %403 = vlog2.f32 %v252_v56 }
 0x3de   :  { %v404_v57 = vpop.eup %403 }
 0x3df   :  { %v254_v59 = vmul.f32 0.6931472, %v404_v57 }
 0x3e1   :  { %v308_v1 = vsub.f32 %v247_v47, %v254_v59 }
 0x456   :  { %v303_v60 = vpop.xlane.xlu0 %302 }
 0x457   :  { %v304_v62 = vcvt.f32.s32 %v303_v60 }
 0x459   :  { %v307_v63 = vadd.s32 %v306_v61, %v304_v62 }
 0x45b   :  { %vm309_vm5 = vcmp.eq.s32.totalorder %v620_v8, %v307_v63  ;;  %v315_v4 = vcvt.s32.f32 %v307_v63 }
 0x45c   :  { %v310_v2 = vsel %vm309_vm5, %v308_v1, 0.0 }
 0x45d   :  { %v311_v3 = vsel %vm243_vm2, %v310_v2, 0.0 }
 0x45e   :  { %312 = vadd.xlane.f32.xlu1 %v311_v3 }
 0x4eb   :  { %v313_v0 = vpop.xlane.xlu1 %312 }
 0x4ec   :  { %v316_v5 = vsel %vm314_vm6, %v315_v4, %v313_v0 }
 0x4ed   :  { %318 = vst.msk [vmem:[%s648_s8] sm:$0xff] %vm317_vm7, %v316_v5 }
 0x4ee   :  { %323 = vsyncpa [#allocation5], 1 }

</bundles_post_ra>
